<compile_context>
chip_gen: v5e
topology: v5e:2x2
jax: 0.10.0
libtpu: 0.0.40
codegen_flags: <defaults>
</compile_context>

<pallas_src>
import numpy as np
import jax
import jax.numpy as jnp
from jax.experimental import pallas as pl
from jax.experimental.pallas import tpu as pltpu


_LANE = 128     # lane-dense last dim
_NC = 2         # row-tile axis split for megacore (v7x); harmless on 1-TC chips


def _cdiv(a, b):
    return (a + b - 1) // b


def _round_up(x, m):
    return _cdiv(x, m) * m


def _vmem_capacity_bytes():
    try:
        info = pltpu.get_tpu_info()
        cap = getattr(info, "vmem_capacity_bytes", None)
        if cap:
            return int(cap)
    except Exception:
        pass
    return 64 * 1024 * 1024   # conservative default (v7x per-core VMEM)


def _choose_tiling(n_elems):
    """Pick (row_tile, tiles_per_core, padded_rows, vmem_limit_bytes)."""
    rows8 = _round_up(_cdiv(n_elems, _LANE), 8)
    vmem = _vmem_capacity_bytes()
    # 5 input + 2 output f32 streams, double-buffered; keep them in ~1/4 of VMEM.
    budget = vmem // 4
    tr_cap = budget // (7 * 2 * _LANE * 4)
    tr_max = max(8, min(2048, (tr_cap // 8) * 8))
    ntiles = max(_NC, _cdiv(rows8, tr_max))
    ntiles = _round_up(ntiles, _NC)
    tr = _round_up(_cdiv(rows8, ntiles), 8)
    rows_pad = ntiles * tr
    vmem_limit = int(min(vmem // 2, 96 * 1024 * 1024))
    return tr, ntiles // _NC, rows_pad, vmem_limit


# ----------------------------------------------------------------------------
# Pallas kernel: elementwise MSE*mask, neg-region maps, and masked reductions
# accumulated into a resident per-core (48,128) stats block (6 stats x (8,128)).
# Stats order: [pos_cnt_g, pos_sum_g, tot_sum_g, pos_cnt_a, pos_sum_a, tot_sum_a]
# ----------------------------------------------------------------------------
def _maploss_kernel(gh_ref, gah_ref, pgh_ref, pgah_ref, mask_ref,
                    neg_g_ref, neg_a_ref, stats_ref):
    j = pl.program_id(1)

    @pl.when(j == 0)
    def _init():
        stats_ref[...] = jnp.zeros_like(stats_ref)

    f32 = jnp.float32
    gh = gh_ref[...].astype(f32)
    gah = gah_ref[...].astype(f32)
    mask = mask_ref[...].astype(f32)

    dg = pgh_ref[...].astype(f32) - gh
    da = pgah_ref[...].astype(f32) - gah
    loss_g = dg * dg * mask            # MSELoss(reduce=False) * mask
    loss_a = da * da * mask

    pos_g = (gh > 0.1).astype(f32)
    pos_a = (gah > 0.1).astype(f32)

    # Negative-region maps (consumed by the OHEM top-k selection in JAX).
    # TODO(synk): these two output streams could be removed entirely with an
    # in-kernel histogram/threshold selection; kept for an exact top-k sum.
    neg_g_ref[...] = loss_g * (1.0 - pos_g)
    neg_a_ref[...] = loss_a * (1.0 - pos_a)

    def fold(x):
        # (TR, 128) -> (TR//8, 8, 128) is a layout-preserving sublane split,
        # so the axis-0 sum is pure VPU vreg accumulation (no XLU in hot loop).
        r, l = x.shape
        return jnp.sum(x.reshape(r // 8, 8, l), axis=0)

    terms = (pos_g, loss_g * pos_g, loss_g,
             pos_a, loss_a * pos_a, loss_a)
    for i, t in enumerate(terms):
        stats_ref[8 * i:8 * i + 8, :] += fold(t)


def _run_maploss_kernel(gh2, gah2, pgh2, pgah2, mask2, *, tr, tiles_per_core,
                        vmem_limit):
    rows_pad, lane = gh2.shape
    grid = (_NC, tiles_per_core)

    def row_map(c, j):
        return (c * tiles_per_core + j, 0)

    tile = pl.BlockSpec((tr, lane), row_map)
    stats_spec = pl.BlockSpec((None, 48, lane), lambda c, j: (c, 0, 0))

    return pl.pallas_call(
        _maploss_kernel,
        out_shape=(
            jax.ShapeDtypeStruct((rows_pad, lane), jnp.float32),   # neg_region_g
            jax.ShapeDtypeStruct((rows_pad, lane), jnp.float32),   # neg_region_a
            jax.ShapeDtypeStruct((_NC, 48, lane), jnp.float32),    # per-core stats
        ),
        grid=grid,
        in_specs=[tile, tile, tile, tile, tile],
        out_specs=(tile, tile, stats_spec),
        compiler_params=pltpu.CompilerParams(
            dimension_semantics=("parallel", "arbitrary"),
            vmem_limit_bytes=vmem_limit),
    )(gh2, gah2, pgh2, pgah2, mask2)


# ----------------------------------------------------------------------------
# Exact top-k sum for non-negative values via bit-pattern bisection (no sort).
# x: (2, M) >= 0, k: (2,) integer-valued. Returns (2,) top-k sums.
# ----------------------------------------------------------------------------
def _ohem_topk_sums(neg_g, neg_a, k_g, k_a):
    x = jnp.stack([neg_g.reshape(-1), neg_a.reshape(-1)], axis=0)
    k = jnp.stack([k_g, k_a]).astype(jnp.int32)

    # Non-negative f32 bit patterns are monotone in value -> exact bisection.
    xb = jax.lax.bitcast_convert_type(x, jnp.int32)
    hi0 = jnp.max(xb, axis=1)
    lo0 = jnp.zeros_like(hi0)

    def count_ge(bits):
        t = jax.lax.bitcast_convert_type(bits, jnp.float32)
        return jnp.sum((x >= t[:, None]).astype(jnp.int32), axis=1)

    def body(_, carry):
        lo, hi = carry
        mid = lo + (hi - lo + 1) // 2
        ok = count_ge(mid) >= k
        return jnp.where(ok, mid, lo), jnp.where(ok, hi, mid - 1)

    lo, _ = jax.lax.fori_loop(0, 32, body, (lo0, hi0))
    v = jax.lax.bitcast_convert_type(lo, jnp.float32)        # k-th largest value

    gt = x > v[:, None]
    cnt_gt = jnp.sum(gt.astype(jnp.int32), axis=1).astype(jnp.float32)
    sum_gt = jnp.sum(jnp.where(gt, x, 0.0), axis=1)
    return sum_gt + (k.astype(jnp.float32) - cnt_gt) * v


def _branch_loss(pos_cnt, pos_sum, neg_cnt, neg_sum, topk_sum):
    # Same division-by-zero hazard as the torch module (pos_cnt/neg_cnt == 0).
    pos_loss = pos_sum / pos_cnt
    neg_loss = jnp.where(neg_cnt < 3.0 * pos_cnt,
                         neg_sum / neg_cnt,
                         topk_sum / (3.0 * pos_cnt))
    return pos_loss + neg_loss


def _prep(x, rows_pad):
    x = x.reshape(-1)
    pad = rows_pad * _LANE - x.shape[0]
    if pad:
        x = jnp.pad(x, (0, pad))
    return x.reshape(rows_pad, _LANE)


def maploss_forward(gh_label, gah_label, p_gh, p_gah, mask):
    B = gh_label.shape[0]
    n = int(np.prod(gh_label.shape))
    tr, tiles_per_core, rows_pad, vmem_limit = _choose_tiling(n)

    def cast(x):
        # keep bf16 streams narrow (cast to f32 inside the kernel)
        return x if x.dtype in (jnp.float32, jnp.bfloat16) else x.astype(jnp.float32)

    inputs = [_prep(cast(a), rows_pad)
              for a in (gh_label, gah_label, p_gh, p_gah, mask)]

    neg_g, neg_a, stats = _run_maploss_kernel(
        *inputs, tr=tr, tiles_per_core=tiles_per_core, vmem_limit=vmem_limit)

    # (NC, 48, 128) vreg accumulators -> 6 scalars (single cross-lane reduce).
    s = jnp.sum(stats.reshape(_NC, 6, -1), axis=(0, 2))
    pos_cnt_g, pos_sum_g, tot_sum_g = s[0], s[1], s[2]
    pos_cnt_a, pos_sum_a, tot_sum_a = s[3], s[4], s[5]

    nf = jnp.float32(n)                      # true element count (excl. padding)
    neg_cnt_g = nf - pos_cnt_g
    neg_cnt_a = nf - pos_cnt_a
    neg_sum_g = tot_sum_g - pos_sum_g
    neg_sum_a = tot_sum_a - pos_sum_a

    k_g = jnp.floor(3.0 * pos_cnt_g)
    k_a = jnp.floor(3.0 * pos_cnt_a)
    topk = _ohem_topk_sums(neg_g, neg_a, k_g, k_a)

    char_loss = _branch_loss(pos_cnt_g, pos_sum_g, neg_cnt_g, neg_sum_g, topk[0])
    affi_loss = _branch_loss(pos_cnt_a, pos_sum_a, neg_cnt_a, neg_sum_a, topk[1])
    return char_loss / B + affi_loss / B


# ----------------------------------------------------------------------------
# Pure-numpy reference (mirrors the PyTorch module exactly).
# ----------------------------------------------------------------------------
def _ref_single_image_loss(pre_loss, label):
    pos = (label > 0.1).astype(np.float32)
    pn = pos.sum()
    pos_loss = (pre_loss * pos).sum() / pn
    neg = (label <= 0.1).astype(np.float32)
    nn = neg.sum()
    neg_region = pre_loss * neg
    if nn < 3 * pn:
        neg_loss = neg_region.sum() / nn
    else:
        k = int(3 * pn)
        neg_loss = np.sort(neg_region.reshape(-1))[::-1][:k].sum() / (pn * 3)
    return pos_loss + neg_loss


def _ref_maploss(gh, gah, pgh, pgah, mask):
    loss_g = (pgh - gh) ** 2 * mask
    loss_a = (pgah - gah) ** 2 * mask
    char_loss = _ref_single_image_loss(loss_g, gh)
    affi_loss = _ref_single_image_loss(loss_a, gah)
    return char_loss / gh.shape[0] + affi_loss / gh.shape[0]


if __name__ == "__main__":
    key = jax.random.PRNGKey(0)
    k1, k2, k3, k4, k5 = jax.random.split(key, 5)

    B, H, W = 2, 16, 16
    gh_label = jax.random.uniform(k1, (B, H, W), jnp.float32)            # mostly positive -> mean branch
    gah_label = jax.random.uniform(k2, (B, H, W), jnp.float32) * 0.125   # mostly negative -> top-k branch
    p_gh = jax.random.uniform(k3, (B, H, W), jnp.float32)
    p_gah = jax.random.uniform(k4, (B, H, W), jnp.float32)
    mask = (jax.random.uniform(k5, (B, H, W), jnp.float32) > 0.2).astype(jnp.float32)

    out = jax.jit(maploss_forward)(gh_label, gah_label, p_gh, p_gah, mask)
    out = jax.block_until_ready(out)

    ref = _ref_maploss(np.asarray(gh_label), np.asarray(gah_label),
                       np.asarray(p_gh), np.asarray(p_gah), np.asarray(mask))
    np.testing.assert_allclose(np.asarray(out), ref, rtol=1e-4, atol=1e-5)

    print("KERNEL_OK")
</pallas_src>

<mosaic_0001>
module attributes {stable_mosaic.version = 11 : i64} {
  func.func @_maploss_kernel(%arg0: i32, %arg1: i32, %arg2: memref<8x128xf32, #tpu.memory_space<vmem>>, %arg3: memref<8x128xf32, #tpu.memory_space<vmem>>, %arg4: memref<8x128xf32, #tpu.memory_space<vmem>>, %arg5: memref<8x128xf32, #tpu.memory_space<vmem>>, %arg6: memref<8x128xf32, #tpu.memory_space<vmem>>, %arg7: memref<8x128xf32, #tpu.memory_space<vmem>>, %arg8: memref<8x128xf32, #tpu.memory_space<vmem>>, %arg9: memref<1x48x128xf32, #tpu.memory_space<vmem>>) attributes {dimension_semantics = [#tpu.dimension_semantics<parallel>, #tpu.dimension_semantics<arbitrary>], iteration_bounds = array<i64: 2, 1>, scalar_prefetch = 0 : i64, scratch_operands = 0 : i64, tpu.core_type = #tpu.core_type<tc>, window_params = [{transform_indices = @transform_0, window_bounds = array<i64: 8, 128>}, {transform_indices = @transform_1, window_bounds = array<i64: 8, 128>}, {transform_indices = @transform_2, window_bounds = array<i64: 8, 128>}, {transform_indices = @transform_3, window_bounds = array<i64: 8, 128>}, {transform_indices = @transform_4, window_bounds = array<i64: 8, 128>}, {transform_indices = @transform_5, window_bounds = array<i64: 8, 128>}, {transform_indices = @transform_6, window_bounds = array<i64: 8, 128>}, {transform_indices = @transform_7, window_bounds = array<i64: 1, 48, 128>}]} {
    %c0_i32 = arith.constant 0 : i32
    %0 = arith.cmpi eq, %arg1, %c0_i32 : i32
    %1 = arith.extui %0 : i1 to i32
    %c0_i32_0 = arith.constant 0 : i32
    %2 = arith.cmpi ne, %1, %c0_i32_0 : i32
    scf.if %2 {
      %cst_54 = arith.constant 0.000000e+00 : f32
      %80 = vector.broadcast %cst_54 : f32 to vector<48x128xf32>
      %c0_55 = arith.constant 0 : index
      %c0_56 = arith.constant 0 : index
      %c0_57 = arith.constant 0 : index
      %81 = vector.load %arg9[%c0_55, %c0_56, %c0_57] : memref<1x48x128xf32, #tpu.memory_space<vmem>>, vector<1x48x128xf32>
      %82 = vector.shape_cast %81 : vector<1x48x128xf32> to vector<48x128xf32>
      %83 = vector.shape_cast %80 : vector<48x128xf32> to vector<1x48x128xf32>
      tpu.vector_store %arg9[%c0_55, %c0_56, %c0_57], %83 {strides = array<i32>} : memref<1x48x128xf32, #tpu.memory_space<vmem>>, vector<1x48x128xf32>,
    } else {
    }
    %c0 = arith.constant 0 : index
    %c0_1 = arith.constant 0 : index
    %3 = vector.load %arg2[%c0, %c0_1] : memref<8x128xf32, #tpu.memory_space<vmem>>, vector<8x128xf32>
    %c0_2 = arith.constant 0 : index
    %c0_3 = arith.constant 0 : index
    %4 = vector.load %arg3[%c0_2, %c0_3] : memref<8x128xf32, #tpu.memory_space<vmem>>, vector<8x128xf32>
    %c0_4 = arith.constant 0 : index
    %c0_5 = arith.constant 0 : index
    %5 = vector.load %arg6[%c0_4, %c0_5] : memref<8x128xf32, #tpu.memory_space<vmem>>, vector<8x128xf32>
    %c0_6 = arith.constant 0 : index
    %c0_7 = arith.constant 0 : index
    %6 = vector.load %arg4[%c0_6, %c0_7] : memref<8x128xf32, #tpu.memory_space<vmem>>, vector<8x128xf32>
    %7 = arith.subf %6, %3 : vector<8x128xf32>
    %c0_8 = arith.constant 0 : index
    %c0_9 = arith.constant 0 : index
    %8 = vector.load %arg5[%c0_8, %c0_9] : memref<8x128xf32, #tpu.memory_space<vmem>>, vector<8x128xf32>
    %9 = arith.subf %8, %4 : vector<8x128xf32>
    %10 = arith.mulf %7, %7 : vector<8x128xf32>
    %11 = arith.mulf %10, %5 : vector<8x128xf32>
    %12 = arith.mulf %9, %9 : vector<8x128xf32>
    %13 = arith.mulf %12, %5 : vector<8x128xf32>
    %cst = arith.constant 1.000000e-01 : f32
    %14 = vector.broadcast %cst : f32 to vector<8x128xf32>
    %15 = arith.cmpf ogt, %3, %14 : vector<8x128xf32>
    %16 = arith.extui %15 : vector<8x128xi1> to vector<8x128xi32>
    %17 = arith.sitofp %16 : vector<8x128xi32> to vector<8x128xf32>
    %cst_10 = arith.constant 1.000000e-01 : f32
    %18 = vector.broadcast %cst_10 : f32 to vector<8x128xf32>
    %19 = arith.cmpf ogt, %4, %18 : vector<8x128xf32>
    %20 = arith.extui %19 : vector<8x128xi1> to vector<8x128xi32>
    %21 = arith.sitofp %20 : vector<8x128xi32> to vector<8x128xf32>
    %cst_11 = arith.constant 1.000000e+00 : f32
    %22 = vector.broadcast %cst_11 : f32 to vector<8x128xf32>
    %23 = arith.subf %22, %17 : vector<8x128xf32>
    %24 = arith.mulf %11, %23 : vector<8x128xf32>
    %c0_12 = arith.constant 0 : index
    %c0_13 = arith.constant 0 : index
    %25 = vector.load %arg7[%c0_12, %c0_13] : memref<8x128xf32, #tpu.memory_space<vmem>>, vector<8x128xf32>
    tpu.vector_store %arg7[%c0_12, %c0_13], %24 {strides = array<i32>} : memref<8x128xf32, #tpu.memory_space<vmem>>, vector<8x128xf32>,
    %cst_14 = arith.constant 1.000000e+00 : f32
    %26 = vector.broadcast %cst_14 : f32 to vector<8x128xf32>
    %27 = arith.subf %26, %21 : vector<8x128xf32>
    %28 = arith.mulf %13, %27 : vector<8x128xf32>
    %c0_15 = arith.constant 0 : index
    %c0_16 = arith.constant 0 : index
    %29 = vector.load %arg8[%c0_15, %c0_16] : memref<8x128xf32, #tpu.memory_space<vmem>>, vector<8x128xf32>
    tpu.vector_store %arg8[%c0_15, %c0_16], %28 {strides = array<i32>} : memref<8x128xf32, #tpu.memory_space<vmem>>, vector<8x128xf32>,
    %30 = arith.mulf %11, %17 : vector<8x128xf32>
    %31 = arith.mulf %13, %21 : vector<8x128xf32>
    %c0_17 = arith.constant 0 : index
    %c0_18 = arith.constant 0 : index
    %c0_19 = arith.constant 0 : index
    %32 = vector.load %arg9[%c0_17, %c0_18, %c0_19] : memref<1x48x128xf32, #tpu.memory_space<vmem>>, vector<1x8x128xf32>
    %33 = vector.shape_cast %32 : vector<1x8x128xf32> to vector<8x128xf32>
    %34 = vector.shape_cast %17 : vector<8x128xf32> to vector<1x8x128xf32>
    %cst_20 = arith.constant dense<0.000000e+00> : vector<8x128xf32>
    %35 = vector.multi_reduction <add>, %34, %cst_20 [0] : vector<1x8x128xf32> to vector<8x128xf32>
    %36 = arith.addf %33, %35 : vector<8x128xf32>
    %c0_21 = arith.constant 0 : index
    %c0_22 = arith.constant 0 : index
    %c0_23 = arith.constant 0 : index
    %37 = vector.load %arg9[%c0_21, %c0_22, %c0_23] : memref<1x48x128xf32, #tpu.memory_space<vmem>>, vector<1x8x128xf32>
    %38 = vector.shape_cast %37 : vector<1x8x128xf32> to vector<8x128xf32>
    %39 = vector.shape_cast %36 : vector<8x128xf32> to vector<1x8x128xf32>
    tpu.vector_store %arg9[%c0_21, %c0_22, %c0_23], %39 {strides = array<i32>} : memref<1x48x128xf32, #tpu.memory_space<vmem>>, vector<1x8x128xf32>,
    %c0_24 = arith.constant 0 : index
    %c8 = arith.constant 8 : index
    %c0_25 = arith.constant 0 : index
    %40 = vector.load %arg9[%c0_24, %c8, %c0_25] : memref<1x48x128xf32, #tpu.memory_space<vmem>>, vector<1x8x128xf32>
    %41 = vector.shape_cast %40 : vector<1x8x128xf32> to vector<8x128xf32>
    %42 = vector.shape_cast %30 : vector<8x128xf32> to vector<1x8x128xf32>
    %cst_26 = arith.constant dense<0.000000e+00> : vector<8x128xf32>
    %43 = vector.multi_reduction <add>, %42, %cst_26 [0] : vector<1x8x128xf32> to vector<8x128xf32>
    %44 = arith.addf %41, %43 : vector<8x128xf32>
    %c0_27 = arith.constant 0 : index
    %c8_28 = arith.constant 8 : index
    %c0_29 = arith.constant 0 : index
    %45 = vector.load %arg9[%c0_27, %c8_28, %c0_29] : memref<1x48x128xf32, #tpu.memory_space<vmem>>, vector<1x8x128xf32>
    %46 = vector.shape_cast %45 : vector<1x8x128xf32> to vector<8x128xf32>
    %47 = vector.shape_cast %44 : vector<8x128xf32> to vector<1x8x128xf32>
    tpu.vector_store %arg9[%c0_27, %c8_28, %c0_29], %47 {strides = array<i32>} : memref<1x48x128xf32, #tpu.memory_space<vmem>>, vector<1x8x128xf32>,
    %c0_30 = arith.constant 0 : index
    %c16 = arith.constant 16 : index
    %c0_31 = arith.constant 0 : index
    %48 = vector.load %arg9[%c0_30, %c16, %c0_31] : memref<1x48x128xf32, #tpu.memory_space<vmem>>, vector<1x8x128xf32>
    %49 = vector.shape_cast %48 : vector<1x8x128xf32> to vector<8x128xf32>
    %50 = vector.shape_cast %11 : vector<8x128xf32> to vector<1x8x128xf32>
    %cst_32 = arith.constant dense<0.000000e+00> : vector<8x128xf32>
    %51 = vector.multi_reduction <add>, %50, %cst_32 [0] : vector<1x8x128xf32> to vector<8x128xf32>
    %52 = arith.addf %49, %51 : vector<8x128xf32>
    %c0_33 = arith.constant 0 : index
    %c16_34 = arith.constant 16 : index
    %c0_35 = arith.constant 0 : index
    %53 = vector.load %arg9[%c0_33, %c16_34, %c0_35] : memref<1x48x128xf32, #tpu.memory_space<vmem>>, vector<1x8x128xf32>
    %54 = vector.shape_cast %53 : vector<1x8x128xf32> to vector<8x128xf32>
    %55 = vector.shape_cast %52 : vector<8x128xf32> to vector<1x8x128xf32>
    tpu.vector_store %arg9[%c0_33, %c16_34, %c0_35], %55 {strides = array<i32>} : memref<1x48x128xf32, #tpu.memory_space<vmem>>, vector<1x8x128xf32>,
    %c0_36 = arith.constant 0 : index
    %c24 = arith.constant 24 : index
    %c0_37 = arith.constant 0 : index
    %56 = vector.load %arg9[%c0_36, %c24, %c0_37] : memref<1x48x128xf32, #tpu.memory_space<vmem>>, vector<1x8x128xf32>
    %57 = vector.shape_cast %56 : vector<1x8x128xf32> to vector<8x128xf32>
    %58 = vector.shape_cast %21 : vector<8x128xf32> to vector<1x8x128xf32>
    %cst_38 = arith.constant dense<0.000000e+00> : vector<8x128xf32>
    %59 = vector.multi_reduction <add>, %58, %cst_38 [0] : vector<1x8x128xf32> to vector<8x128xf32>
    %60 = arith.addf %57, %59 : vector<8x128xf32>
    %c0_39 = arith.constant 0 : index
    %c24_40 = arith.constant 24 : index
    %c0_41 = arith.constant 0 : index
    %61 = vector.load %arg9[%c0_39, %c24_40, %c0_41] : memref<1x48x128xf32, #tpu.memory_space<vmem>>, vector<1x8x128xf32>
    %62 = vector.shape_cast %61 : vector<1x8x128xf32> to vector<8x128xf32>
    %63 = vector.shape_cast %60 : vector<8x128xf32> to vector<1x8x128xf32>
    tpu.vector_store %arg9[%c0_39, %c24_40, %c0_41], %63 {strides = array<i32>} : memref<1x48x128xf32, #tpu.memory_space<vmem>>, vector<1x8x128xf32>,
    %c0_42 = arith.constant 0 : index
    %c32 = arith.constant 32 : index
    %c0_43 = arith.constant 0 : index
    %64 = vector.load %arg9[%c0_42, %c32, %c0_43] : memref<1x48x128xf32, #tpu.memory_space<vmem>>, vector<1x8x128xf32>
    %65 = vector.shape_cast %64 : vector<1x8x128xf32> to vector<8x128xf32>
    %66 = vector.shape_cast %31 : vector<8x128xf32> to vector<1x8x128xf32>
    %cst_44 = arith.constant dense<0.000000e+00> : vector<8x128xf32>
    %67 = vector.multi_reduction <add>, %66, %cst_44 [0] : vector<1x8x128xf32> to vector<8x128xf32>
    %68 = arith.addf %65, %67 : vector<8x128xf32>
    %c0_45 = arith.constant 0 : index
    %c32_46 = arith.constant 32 : index
    %c0_47 = arith.constant 0 : index
    %69 = vector.load %arg9[%c0_45, %c32_46, %c0_47] : memref<1x48x128xf32, #tpu.memory_space<vmem>>, vector<1x8x128xf32>
    %70 = vector.shape_cast %69 : vector<1x8x128xf32> to vector<8x128xf32>
    %71 = vector.shape_cast %68 : vector<8x128xf32> to vector<1x8x128xf32>
    tpu.vector_store %arg9[%c0_45, %c32_46, %c0_47], %71 {strides = array<i32>} : memref<1x48x128xf32, #tpu.memory_space<vmem>>, vector<1x8x128xf32>,
    %c0_48 = arith.constant 0 : index
    %c40 = arith.constant 40 : index
    %c0_49 = arith.constant 0 : index
    %72 = vector.load %arg9[%c0_48, %c40, %c0_49] : memref<1x48x128xf32, #tpu.memory_space<vmem>>, vector<1x8x128xf32>
    %73 = vector.shape_cast %72 : vector<1x8x128xf32> to vector<8x128xf32>
    %74 = vector.shape_cast %13 : vector<8x128xf32> to vector<1x8x128xf32>
    %cst_50 = arith.constant dense<0.000000e+00> : vector<8x128xf32>
    %75 = vector.multi_reduction <add>, %74, %cst_50 [0] : vector<1x8x128xf32> to vector<8x128xf32>
    %76 = arith.addf %73, %75 : vector<8x128xf32>
    %c0_51 = arith.constant 0 : index
    %c40_52 = arith.constant 40 : index
    %c0_53 = arith.constant 0 : index
    %77 = vector.load %arg9[%c0_51, %c40_52, %c0_53] : memref<1x48x128xf32, #tpu.memory_space<vmem>>, vector<1x8x128xf32>
    %78 = vector.shape_cast %77 : vector<1x8x128xf32> to vector<8x128xf32>
    %79 = vector.shape_cast %76 : vector<8x128xf32> to vector<1x8x128xf32>
    tpu.vector_store %arg9[%c0_51, %c40_52, %c0_53], %79 {strides = array<i32>} : memref<1x48x128xf32, #tpu.memory_space<vmem>>, vector<1x8x128xf32>,
    return
  }
  func.func @transform_0(%arg0: i32, %arg1: i32) -> (i32, i32) {
    %c1_i32 = arith.constant 1 : i32
    %0 = arith.muli %arg0, %c1_i32 : i32
    %1 = arith.addi %0, %arg1 : i32
    %c0_i32 = arith.constant 0 : i32
    %c0_i32_0 = arith.constant 0 : i32
    return %1, %c0_i32 : i32, i32
  }
  func.func @transform_1(%arg0: i32, %arg1: i32) -> (i32, i32) {
    %c1_i32 = arith.constant 1 : i32
    %0 = arith.muli %arg0, %c1_i32 : i32
    %1 = arith.addi %0, %arg1 : i32
    %c0_i32 = arith.constant 0 : i32
    %c0_i32_0 = arith.constant 0 : i32
    return %1, %c0_i32 : i32, i32
  }
  func.func @transform_2(%arg0: i32, %arg1: i32) -> (i32, i32) {
    %c1_i32 = arith.constant 1 : i32
    %0 = arith.muli %arg0, %c1_i32 : i32
    %1 = arith.addi %0, %arg1 : i32
    %c0_i32 = arith.constant 0 : i32
    %c0_i32_0 = arith.constant 0 : i32
    return %1, %c0_i32 : i32, i32
  }
  func.func @transform_3(%arg0: i32, %arg1: i32) -> (i32, i32) {
    %c1_i32 = arith.constant 1 : i32
    %0 = arith.muli %arg0, %c1_i32 : i32
    %1 = arith.addi %0, %arg1 : i32
    %c0_i32 = arith.constant 0 : i32
    %c0_i32_0 = arith.constant 0 : i32
    return %1, %c0_i32 : i32, i32
  }
  func.func @transform_4(%arg0: i32, %arg1: i32) -> (i32, i32) {
    %c1_i32 = arith.constant 1 : i32
    %0 = arith.muli %arg0, %c1_i32 : i32
    %1 = arith.addi %0, %arg1 : i32
    %c0_i32 = arith.constant 0 : i32
    %c0_i32_0 = arith.constant 0 : i32
    return %1, %c0_i32 : i32, i32
  }
  func.func @transform_5(%arg0: i32, %arg1: i32) -> (i32, i32) {
    %c1_i32 = arith.constant 1 : i32
    %0 = arith.muli %arg0, %c1_i32 : i32
    %1 = arith.addi %0, %arg1 : i32
    %c0_i32 = arith.constant 0 : i32
    %c0_i32_0 = arith.constant 0 : i32
    return %1, %c0_i32 : i32, i32
  }
  func.func @transform_6(%arg0: i32, %arg1: i32) -> (i32, i32) {
    %c1_i32 = arith.constant 1 : i32
    %0 = arith.muli %arg0, %c1_i32 : i32
    %1 = arith.addi %0, %arg1 : i32
    %c0_i32 = arith.constant 0 : i32
    %c0_i32_0 = arith.constant 0 : i32
    return %1, %c0_i32 : i32, i32
  }
  func.func @transform_7(%arg0: i32, %arg1: i32) -> (i32, i32, i32) {
    %c0_i32 = arith.constant 0 : i32
    %c0_i32_0 = arith.constant 0 : i32
    %c0_i32_1 = arith.constant 0 : i32
    return %arg0, %c0_i32, %c0_i32_0 : i32, i32, i32
  }
}

</mosaic_0001>

<bundles_post_ra>
// kernel: custom-call
= control target key start
LH: loop header
LB: loop body
LE: loop exit
PB: predicated region body
PF: predicated region fallthrough
CT: control target
= control target key end

     0   :  { %s6_s0 = inlined_call_operand.vmem [shape: s32[2], index: 0, kind: output, shape index: {}]  }

// kernel: maploss_forward.1
= control target key start
LH: loop header
LB: loop body
LE: loop exit
PB: predicated region body
PF: predicated region fallthrough
CT: control target
= control target key end

     0   :  { %s769_s24 = smov 0   ;;  %s771_s25 = smov 0   ;;  %s829_s0 = inlined_call_operand.vmem [shape: f32[16,128], index: 0, kind: input, shape index: {}]   ;;  %s830_s1 = inlined_call_operand.vmem [shape: f32[16,128], index: 1, kind: input, shape index: {}]   ;;  %s831_s2 = inlined_call_operand.vmem [shape: f32[16,128], index: 2, kind: input, shape index: {}]   ;;  %s832_s3 = inlined_call_operand.vmem [shape: f32[16,128], index: 3, kind: input, shape index: {}]   ;;  %s833_s4 = inlined_call_operand.vmem [shape: f32[16,128], index: 4, kind: input, shape index: {}]   ;;  %s834_s5 = inlined_call_operand.vmem [shape: f32[16,128], index: 5, kind: output, shape index: {0}]   ;;  %s835_s6 = inlined_call_operand.vmem [shape: f32[16,128], index: 6, kind: output, shape index: {1}]   ;;  %s836_s7 = inlined_call_operand.vmem [shape: f32[2,48,128], index: 7, kind: output, shape index: {2}]  }
   0x1   :  { %s773_s26 = smov 0  }
   0x2 LB: > { %s30_s27 = sadd.s32 1, %s722_s25  ;;  %p665_p0 = scmp.ge.s32.totalorder %s726_s26, 1  ;;  %s726_s26 = sphi %s773_s26, %s18_s26   ;;  %s722_s25 = sphi %s771_s25, %s838_s25   ;;  %s718_s24 = sphi %s769_s24, %s837_s24  }
   0x3   : > { %p32_p1 = scmp.ge.s32.totalorder %s30_s27, 2  ;;  %p313_p2 = scmp.lt.s32.totalorder %s726_s26, 3 }
   0x5   : > { %s840_s27 = smov (%p32_p1, %s30_s27), 0  ;;  %p314_p3 = pnand %p665_p0, %p313_p2 }
   0x6   : > { %p376_p4 = scmp.lt.s32.totalorder (!%p314_p3), %s718_s24, 1 }
   0x7   : > { %317 = sbr.rel (%p314_p3) target bundleno = 30 (0x1e), region = 40 }
   0xc   : > { %s842_s24 = smov (!%p376_p4, %s718_s24), 1  ;;  %v728_v4 = vmov 0.0  }
   0xd   : > { %s678_s28 = smul.u32 48, %s842_s24  ;;  %s787_s29 = sshll.u32 %s842_s24, 3 }
   0xe   : > { %s379_s9 = scalar_lea.vmem %s829_s0, %s787_s29  ;;  %s391_s12 = scalar_lea.vmem %s831_s2, %s787_s29 }
   0xf   : > { %s403_s15 = scalar_lea.vmem %s833_s4, %s787_s29  ;;  %v432_v0 = vld [vmem:[%s379_s9] sm:$0xff]  ;;  %s385_s18 = scalar_lea.vmem %s830_s1, %s787_s29 }
  0x10   : > { %v435_v1 = vld [vmem:[%s391_s12] sm:$0xff]  ;;  %vm443_vm0 = vcmp.gt.f32.partialorder %v432_v0, 0.1  ;;  %s421_s21 = scalar_lea.vmem %s836_s7, %s678_s28  ;;  %s397_s24 = scalar_lea.vmem %s832_s3, %s787_s29 }
  0x11   : > { %v436_v2 = vsub.f32 %v435_v1, %v432_v0  ;;  %v434_v3 = vld [vmem:[%s403_s15] sm:$0xff]  ;;  %v674_v5 = vsel %vm443_vm0, 1.0, %v728_v4  ;;  %s409_s28 = scalar_lea.vmem %s834_s5, %s787_s29  ;;  %s415_s11 = scalar_lea.vmem %s835_s6, %s787_s29 }
  0x12   : > { %v433_v6 = vld [vmem:[%s385_s18] sm:$0xff]  ;;  %v449_v8 = vsub.f32 1.0, %v674_v5  ;;  %460 = vst [vmem:[%s421_s21] sm:$0xff] %v674_v5 }
  0x13   : > { %v439_v7 = vmul.f32 %v436_v2, %v436_v2  ;;  %v437_v9 = vld [vmem:[%s397_s24] sm:$0xff]  ;;  %vm446_vm1 = vcmp.gt.f32.partialorder %v433_v6, 0.1 }
  0x14   : > { %v438_v10 = vsub.f32 %v437_v9, %v433_v6  ;;  %v675_v11 = vsel %vm446_vm1, 1.0, %v728_v4 }
  0x15   : > { %v440_v12 = vmul.f32 %v439_v7, %v434_v3  ;;  %v452_v14 = vsub.f32 1.0, %v675_v11  ;;  %472 = vst [vmem:[%s421_s21 + $0x18] sm:$0xff] %v675_v11 }
  0x16   : > { %v441_v13 = vmul.f32 %v438_v10, %v438_v10 }
  0x17   : > { %v450_v15 = vmul.f32 %v449_v8, %v440_v12  ;;  %v455_v16 = vmul.f32 %v674_v5, %v440_v12  ;;  %468 = vst [vmem:[%s421_s21 + $0x10] sm:$0xff] %v440_v12 }
  0x18   : > { %v442_v17 = vmul.f32 %v441_v13, %v434_v3 }
  0x19   : > { %451 = vst [vmem:[%s409_s28] sm:$0xff] %v450_v15 }
  0x1a   : > { %v453_v18 = vmul.f32 %v452_v14, %v442_v17  ;;  %v456_v19 = vmul.f32 %v675_v11, %v442_v17  ;;  %464 = vst [vmem:[%s421_s21 + $0x8] sm:$0xff] %v455_v16 }
  0x1b   : > { %480 = vst [vmem:[%s421_s21 + $0x28] sm:$0xff] %v442_v17 }
  0x1c   : > { %454 = vst [vmem:[%s415_s11] sm:$0xff] %v453_v18 }
  0x1d   : > { %476 = vst [vmem:[%s421_s21 + $0x20] sm:$0xff] %v456_v19 }
  0x1e PF: > { %s18_s26 = sadd.s32 1, %s726_s26   ;;  %s837_s24 = smov %s722_s25 }
  0x1f   : > { %p15_p5 = scmp.ge.s32.totalorder %s18_s26, 4   ;;  %s838_s25 = smov %s840_s27 }
  0x21   :  { %17 = sbr.rel (!%p15_p5) target bundleno = 2 (0x2), region = 110 }

</bundles_post_ra>
